<compile_context>
chip_gen: v5e
topology: v5e:2x2
jax: 0.10.0
libtpu: 0.0.40
codegen_flags: <defaults>
</compile_context>

<pallas_src>
import functools

import jax
import jax.numpy as jnp
import numpy as np
from jax import lax
from jax.experimental import pallas as pl
from jax.experimental.pallas import tpu as pltpu


def _sinkhorn_kernel(mu_ref, nu_ref, c_ref, pi_ref, *, eps, max_iter):
    mu = mu_ref[0]   # (P1, 1)
    nu = nu_ref[0]   # (1, P2)
    C = c_ref[0]     # (P1, P2)
    P1, P2 = C.shape

    inv_eps = 1.0 / eps
    log_mu = jnp.log(mu + 1e-8)            # (P1, 1)
    log_nu = jnp.log(nu + 1e-8)            # (1, P2)
    negC = C * (-inv_eps)                  # (P1, P2) = -C/eps, hoisted out of the loop

    # Ones vectors so the exp-sums run on the MXU (idle otherwise) not the XLU.
    ones_rows = jnp.ones((1, P1), jnp.float32)   # contracts the P1 (row) axis
    ones_cols = jnp.ones((P2, 1), jnp.float32)   # contracts the P2 (column) axis

    # u0 = v0 = 1  ->  alpha0 = beta0 = 1/eps  (alpha = u/eps, beta = v/eps).
    alpha0 = jnp.full((P1, 1), inv_eps, jnp.float32)
    beta0 = jnp.full((1, P2), inv_eps, jnp.float32)

    def body(_, carry):
        alpha, _beta = carry
        # v-update. torch: v = eps*(log_nu - LSE_rows((-C+u+v)/eps)) + v; the old
        # v cancels exactly inside the LSE, leaving a single broadcast add.
        A = negC + alpha                                    # (P1, P2)   VPU
        m0 = jnp.max(A, axis=0, keepdims=True)              # (1, P2)    XLU
        s0 = jnp.dot(ones_rows, jnp.exp(A - m0),
                     preferred_element_type=jnp.float32)    # (1, P2)    EUP + MXU
        beta = log_nu - (m0 + jnp.log(s0))                  # (1, P2)
        # u-update with the fresh beta; the old u cancels the same way.
        B = negC + beta                                     # (P1, P2)   VPU
        m1 = jnp.max(B, axis=1, keepdims=True)              # (P1, 1)    XLU
        s1 = jnp.dot(jnp.exp(B - m1), ones_cols,
                     preferred_element_type=jnp.float32)    # (P1, 1)    EUP + MXU
        alpha = log_mu - (m1 + jnp.log(s1))                 # (P1, 1)
        return alpha, beta

    alpha, beta = lax.fori_loop(0, max_iter, body, (alpha0, beta0))

    # Transport plan: pi = exp((-C + u + v)/eps) = exp(negC + alpha + beta).
    pi_ref[0] = jnp.exp(negC + alpha + beta)


def sinkhorn_distance(mu, nu, C, *, eps=1e-3, max_iter=100, reduction="none"):
    """Pallas implementation of SinkhornDistance.forward.

    mu: (N, P1), nu: (N, P2), C: (N, P1, P2)  -> (cost (N,), pi (N, P1, P2))
    Note: like the PyTorch forward, `reduction` is not applied to the returned cost.
    """
    N, P1, P2 = C.shape
    mu3 = mu.reshape(N, P1, 1).astype(jnp.float32)
    nu3 = nu.reshape(N, 1, P2).astype(jnp.float32)
    C32 = C.astype(jnp.float32)

    kernel = functools.partial(_sinkhorn_kernel, eps=float(eps), max_iter=int(max_iter))

    # VMEM budget: double-buffered C + pi blocks plus a handful of live
    # full-matrix intermediates inside the loop. Capped at 64 MiB (v7x physical).
    tile_bytes = 4 * P1 * P2
    est = 12 * tile_bytes + (1 << 20)
    vmem_limit = int(min(max(est, 32 << 20), 64 << 20))

    pi = pl.pallas_call(
        kernel,
        out_shape=jax.ShapeDtypeStruct((N, P1, P2), jnp.float32),
        grid_spec=pltpu.PrefetchScalarGridSpec(
            num_scalar_prefetch=0,
            grid=(N,),
            in_specs=[
                pl.BlockSpec((1, P1, 1), lambda b: (b, 0, 0)),
                pl.BlockSpec((1, 1, P2), lambda b: (b, 0, 0)),
                pl.BlockSpec((1, P1, P2), lambda b: (b, 0, 0)),
            ],
            out_specs=pl.BlockSpec((1, P1, P2), lambda b: (b, 0, 0)),
        ),
        compiler_params=pltpu.CompilerParams(
            dimension_semantics=("parallel",),
            vmem_limit_bytes=vmem_limit,
        ),
    )(mu3, nu3, C32)

    # Same semantics as the torch module: cost = sum(pi * C) per batch element.
    cost = jnp.sum(pi * C32, axis=(1, 2))
    return cost, pi


def _sinkhorn_reference(mu, nu, C, *, eps, max_iter):
    """Pure-JAX reference mirroring the PyTorch module exactly."""
    u = jnp.ones_like(mu)
    v = jnp.ones_like(nu)

    def M(C, u, v):
        return (-C + u[..., :, None] + v[..., None, :]) / eps

    def lse(x, axis):
        m = jnp.max(x, axis=axis, keepdims=True)
        return (m + jnp.log(jnp.sum(jnp.exp(x - m), axis=axis, keepdims=True))).squeeze(axis)

    for _ in range(max_iter):
        v = eps * (jnp.log(nu + 1e-8) - lse(jnp.swapaxes(M(C, u, v), -2, -1), -1)) + v
        u = eps * (jnp.log(mu + 1e-8) - lse(M(C, u, v), -1)) + u
    pi = jnp.exp(M(C, u, v))
    cost = jnp.sum(pi * C, axis=(-2, -1))
    return cost, pi


if __name__ == "__main__":
    # Small deterministic example: N=2 point clouds, P1=16 vs P2=32 points.
    N, P1, P2 = 2, 16, 32
    eps, max_iter = 1e-2, 100

    key = jax.random.PRNGKey(0)
    k1, k2, k3, k4 = jax.random.split(key, 4)

    # Marginals (positive, sum to 1 per batch) and a pairwise squared-distance cost.
    mu = jax.nn.softmax(jax.random.normal(k1, (N, P1), dtype=jnp.float32), axis=-1)
    nu = jax.nn.softmax(jax.random.normal(k2, (N, P2), dtype=jnp.float32), axis=-1)
    x = jax.random.normal(k3, (N, P1, 2), dtype=jnp.float32)
    y = jax.random.normal(k4, (N, P2, 2), dtype=jnp.float32)
    C = jnp.sum((x[:, :, None, :] - y[:, None, :, :]) ** 2, axis=-1)  # (N, P1, P2)

    cost, pi = sinkhorn_distance(mu, nu, C, eps=eps, max_iter=max_iter)
    jax.block_until_ready((cost, pi))

    cost_ref, pi_ref = _sinkhorn_reference(mu, nu, C, eps=eps, max_iter=max_iter)
    # Slightly looser than before: the eps-hoist / potential-cancellation reorders
    # f32 arithmetic (same math, same fixed point, ~1e-4 relative FP difference).
    np.testing.assert_allclose(np.asarray(cost), np.asarray(cost_ref), rtol=2e-3, atol=1e-6)
    np.testing.assert_allclose(np.asarray(pi), np.asarray(pi_ref), rtol=2e-3, atol=1e-6)

    print("KERNEL_OK")
</pallas_src>

<mosaic_0001>
module attributes {stable_mosaic.version = 11 : i64} {
  func.func @_sinkhorn_kernel(%arg0: i32, %arg1: memref<1x16x1xf32, #tpu.memory_space<vmem>>, %arg2: memref<1x1x32xf32, #tpu.memory_space<vmem>>, %arg3: memref<1x16x32xf32, #tpu.memory_space<vmem>>, %arg4: memref<1x16x32xf32, #tpu.memory_space<vmem>>) attributes {dimension_semantics = [#tpu.dimension_semantics<parallel>], iteration_bounds = array<i64: 2>, scalar_prefetch = 0 : i64, scratch_operands = 0 : i64, tpu.core_type = #tpu.core_type<tc>, window_params = [{transform_indices = @transform_0, window_bounds = array<i64: 1, 16, 1>}, {transform_indices = @transform_1, window_bounds = array<i64: 1, 1, 32>}, {transform_indices = @transform_2, window_bounds = array<i64: 1, 16, 32>}, {transform_indices = @transform_3, window_bounds = array<i64: 1, 16, 32>}]} {
    %c0 = arith.constant 0 : index
    %c0_0 = arith.constant 0 : index
    %c0_1 = arith.constant 0 : index
    %0 = vector.load %arg1[%c0, %c0_0, %c0_1] : memref<1x16x1xf32, #tpu.memory_space<vmem>>, vector<1x16x1xf32>
    %1 = vector.shape_cast %0 : vector<1x16x1xf32> to vector<16x1xf32>
    %c0_2 = arith.constant 0 : index
    %c0_3 = arith.constant 0 : index
    %c0_4 = arith.constant 0 : index
    %2 = vector.load %arg2[%c0_2, %c0_3, %c0_4] : memref<1x1x32xf32, #tpu.memory_space<vmem>>, vector<1x1x32xf32>
    %3 = vector.shape_cast %2 : vector<1x1x32xf32> to vector<1x32xf32>
    %c0_5 = arith.constant 0 : index
    %c0_6 = arith.constant 0 : index
    %c0_7 = arith.constant 0 : index
    %4 = vector.load %arg3[%c0_5, %c0_6, %c0_7] : memref<1x16x32xf32, #tpu.memory_space<vmem>>, vector<1x16x32xf32>
    %5 = vector.shape_cast %4 : vector<1x16x32xf32> to vector<16x32xf32>
    %cst = arith.constant 9.99999993E-9 : f32
    %6 = vector.broadcast %cst : f32 to vector<16x1xf32>
    %7 = arith.addf %1, %6 : vector<16x1xf32>
    %8 = math.log %7 : vector<16x1xf32>
    %cst_8 = arith.constant 9.99999993E-9 : f32
    %9 = vector.broadcast %cst_8 : f32 to vector<1x32xf32>
    %10 = arith.addf %3, %9 : vector<1x32xf32>
    %11 = math.log %10 : vector<1x32xf32>
    %cst_9 = arith.constant -1.000000e+02 : f32
    %12 = vector.broadcast %cst_9 : f32 to vector<16x32xf32>
    %13 = arith.mulf %5, %12 : vector<16x32xf32>
    %cst_10 = arith.constant 1.000000e+00 : f32
    %14 = vector.broadcast %cst_10 : f32 to vector<1x16xf32>
    %cst_11 = arith.constant 1.000000e+00 : f32
    %15 = vector.broadcast %cst_11 : f32 to vector<32x1xf32>
    %cst_12 = arith.constant 1.000000e+02 : f32
    %16 = vector.broadcast %cst_12 : f32 to vector<16x1xf32>
    %cst_13 = arith.constant 1.000000e+02 : f32
    %17 = vector.broadcast %cst_13 : f32 to vector<1x32xf32>
    %c0_i32 = arith.constant 0 : i32
    %c100_i32 = arith.constant 100 : i32
    %18 = arith.addi %c0_i32, %c100_i32 : i32
    %c1_i32 = arith.constant 1 : i32
    %19:2 = scf.for %arg5 = %c0_i32 to %18 step %c1_i32 iter_args(%arg6 = %16, %arg7 = %17) -> (vector<16x1xf32>, vector<1x32xf32>)  : i32 {
      %28 = vector.broadcast %arg6 : vector<16x1xf32> to vector<16x32xf32>
      %29 = arith.addf %13, %28 : vector<16x32xf32>
      %cst_17 = arith.constant dense<0xFF800000> : vector<32xf32>
      %30 = vector.multi_reduction <maximumf>, %29, %cst_17 [0] : vector<16x32xf32> to vector<32xf32>
      %31 = vector.shape_cast %30 : vector<32xf32> to vector<1x32xf32>
      %32 = vector.broadcast %31 : vector<1x32xf32> to vector<16x32xf32>
      %33 = arith.subf %29, %32 : vector<16x32xf32>
      %34 = math.exp %33 : vector<16x32xf32>
      %cst_18 = arith.constant dense<0.000000e+00> : vector<1x32xf32>
      %35 = tpu.matmul %14, %34, %cst_18 {dimension_numbers = #tpu.dot_dimension_numbers<[1], [0], [0], [1], [0, 0, 1, 1], [], []>} : vector<1x16xf32>, vector<16x32xf32>, vector<1x32xf32> -> vector<1x32xf32>
      %36 = math.log %35 : vector<1x32xf32>
      %37 = arith.addf %31, %36 : vector<1x32xf32>
      %38 = arith.subf %11, %37 : vector<1x32xf32>
      %39 = vector.broadcast %38 : vector<1x32xf32> to vector<16x32xf32>
      %40 = arith.addf %13, %39 : vector<16x32xf32>
      %cst_19 = arith.constant dense<0xFF800000> : vector<16xf32>
      %41 = vector.multi_reduction <maximumf>, %40, %cst_19 [1] : vector<16x32xf32> to vector<16xf32>
      %42 = vector.shape_cast %41 : vector<16xf32> to vector<16x1xf32>
      %43 = vector.broadcast %42 : vector<16x1xf32> to vector<16x32xf32>
      %44 = arith.subf %40, %43 : vector<16x32xf32>
      %45 = math.exp %44 : vector<16x32xf32>
      %cst_20 = arith.constant dense<0.000000e+00> : vector<16x1xf32>
      %46 = tpu.matmul %45, %15, %cst_20 {dimension_numbers = #tpu.dot_dimension_numbers<[1], [0], [0], [1], [0, 0, 1, 1], [], []>} : vector<16x32xf32>, vector<32x1xf32>, vector<16x1xf32> -> vector<16x1xf32>
      %47 = math.log %46 : vector<16x1xf32>
      %48 = arith.addf %42, %47 : vector<16x1xf32>
      %49 = arith.subf %8, %48 : vector<16x1xf32>
      scf.yield %49, %38 : vector<16x1xf32>, vector<1x32xf32>
    }
    %20 = vector.broadcast %19#0 : vector<16x1xf32> to vector<16x32xf32>
    %21 = arith.addf %13, %20 : vector<16x32xf32>
    %22 = vector.broadcast %19#1 : vector<1x32xf32> to vector<16x32xf32>
    %23 = arith.addf %21, %22 : vector<16x32xf32>
    %24 = math.exp %23 : vector<16x32xf32>
    %c0_14 = arith.constant 0 : index
    %c0_15 = arith.constant 0 : index
    %c0_16 = arith.constant 0 : index
    %25 = vector.load %arg4[%c0_14, %c0_15, %c0_16] : memref<1x16x32xf32, #tpu.memory_space<vmem>>, vector<1x16x32xf32>
    %26 = vector.shape_cast %25 : vector<1x16x32xf32> to vector<16x32xf32>
    %27 = vector.shape_cast %24 : vector<16x32xf32> to vector<1x16x32xf32>
    tpu.vector_store %arg4[%c0_14, %c0_15, %c0_16], %27 {strides = array<i32>} : memref<1x16x32xf32, #tpu.memory_space<vmem>>, vector<1x16x32xf32>,
    return
  }
  func.func @transform_0(%arg0: i32) -> (i32, i32, i32) {
    %c0_i32 = arith.constant 0 : i32
    %c0_i32_0 = arith.constant 0 : i32
    %c0_i32_1 = arith.constant 0 : i32
    return %arg0, %c0_i32, %c0_i32_0 : i32, i32, i32
  }
  func.func @transform_1(%arg0: i32) -> (i32, i32, i32) {
    %c0_i32 = arith.constant 0 : i32
    %c0_i32_0 = arith.constant 0 : i32
    %c0_i32_1 = arith.constant 0 : i32
    return %arg0, %c0_i32, %c0_i32_0 : i32, i32, i32
  }
  func.func @transform_2(%arg0: i32) -> (i32, i32, i32) {
    %c0_i32 = arith.constant 0 : i32
    %c0_i32_0 = arith.constant 0 : i32
    %c0_i32_1 = arith.constant 0 : i32
    return %arg0, %c0_i32, %c0_i32_0 : i32, i32, i32
  }
  func.func @transform_3(%arg0: i32) -> (i32, i32, i32) {
    %c0_i32 = arith.constant 0 : i32
    %c0_i32_0 = arith.constant 0 : i32
    %c0_i32_1 = arith.constant 0 : i32
    return %arg0, %c0_i32, %c0_i32_0 : i32, i32, i32
  }
}

</mosaic_0001>

<bundles_post_ra>
// kernel: tpu_custom_call.1
= control target key start
LH: loop header
LB: loop body
LE: loop exit
PB: predicated region body
PF: predicated region fallthrough
CT: control target
= control target key end

     0   :  { %8 = vsyncpa [#allocation3], 0  ;;  %s851_s0 = inlined_call_operand.vmem [shape: f32[2,16,1], index: 0, kind: input, shape index: {}]   ;;  %s852_s1 = inlined_call_operand.vmem [shape: f32[2,1,32], index: 1, kind: input, shape index: {}]   ;;  %s853_s2 = inlined_call_operand.vmem [shape: f32[2,16,32], index: 2, kind: input, shape index: {}]   ;;  %s854_s3 = inlined_call_operand.hbm [shape: f32[2,16,32], index: 3, kind: output, shape index: {}]  }
   0x1   :  { %10 = vsyncpa [#allocation3 + $0x1], 0  ;;  %s706_s12 = smov 0   ;;  %s708_s13 = smov 0  }
   0x2   :  { %s710_s14 = smov 0   ;;  %s712_s15 = smov 0  }
   0x3 LB: > { %s727_s16 = sadd.s32 4294967295, %s667_s15   ;;  %s475_s17 = sadd.s32 4294967294, %s667_s15   ;;  %s667_s15 = sphi %s712_s15, %s862_s15   ;;  %s663_s14 = sphi %s710_s14, %s861_s14   ;;  %s659_s13 = sphi %s708_s13, %s860_s13   ;;  %s655_s12 = sphi %s706_s12, %s859_s12  }
   0x4   : > { %s731_s18 = sadd.s32 1, %s667_s15   ;;  %s101_s19 = sadd.s32 1, %s663_s14 }
   0x5   : > { %s98_s20 = ssub.s32 %s667_s15, %s731_s18  ;;  %p111_p0 = scmp.ne.s32.totalorder %s663_s14, %s659_s13 }
   0x6   : > { %p99_p1 = scmp.eq.s32.totalorder %s98_s20, 0  ;;  %p112_p2 = scmp.eq.s32.totalorder %s727_s16, 1 }
   0x7   : > { %p117_p3 = scmp.ne.s32.totalorder %s659_s13, %s655_s12  ;;  %p118_p4 = scmp.eq.s32.totalorder %s475_s17, 1 }
   0x8   : > { %s742_s21 = scalar_select %p99_p1, %s663_s14, %s101_s19  }
   0x9   : > { %p744_p5 = por %p112_p2, %p111_p0  ;;  %p748_p6 = por %p118_p4, %p117_p3 }
   0xa   : > { %p478_p7 = scmp.ge.s32.totalorder %s667_s15, 1  ;;  %p158_p8 = scmp.lt.s32.totalorder %s667_s15, 3 }
   0xc   : > { %p159_p9 = pnand %p478_p7, %p158_p8 }
   0xd   : > { %s187_s24 = sand.u32 (!%p159_p9), 1, %s659_s13   ;;  %p190_p10 = scmp.lt.s32.totalorder (!%p159_p9), %s727_s16, 1 }
   0xe   : > { %162 = sbr.rel (%p159_p9) target bundleno = 749 (0x2ed), region = 32  ;;  %s479_s25 = sshll.u32 (!%p159_p9), %s187_s24, 4 }
   0xf   : > { %s778_s10 = scalar_lea.vmem (!%p159_p9), [#allocation2], %s479_s25  ;;  %s784_s11 = smov (!%p159_p9), 0  }
  0x13   : > { %s191_s26 = scalar_select %p190_p10, %s727_s16, 1  ;;  %v780_v16 = vmov 100.0   ;;  %v782_v17 = vmov 100.0  }
  0x15   : > { %s492_s27 = sshll.u32 %s191_s26, 4  ;;  %s197_s30 = scalar_lea.vmem %s852_s1, %s191_s26 }
  0x16   : > { %s194_s6 = scalar_lea.vmem %s851_s0, %s492_s27  ;;  %s202_s9 = scalar_lea.vmem %s853_s2, %s492_s27  ;;  %v205_v0 = vld [vmem:[%s197_s30] sm:$0x1] }
  0x17   : > { %v203_v1 = vld [vmem:[%s194_s6] sm:$0xff]  ;;  %v204_v2 = vld [vmem:[%s194_s6 + $0x8] sm:$0xff]  ;;  %v214_v4 = vadd.f32 1e-08, %v205_v0 }
  0x18   : > { %v206_v3 = vld [vmem:[%s202_s9] sm:$0xff]  ;;  %v207_v5 = vld [vmem:[%s202_s9 + $0x8] sm:$0xff]  ;;  %v208_v6 = vadd.f32 1e-08, %v203_v1  ;;  %v209_v7 = vadd.f32 1e-08, %v204_v2 }
  0x19   : > { %v768_v8 = vmul.f32 -100.0, %v206_v3  ;;  %567 = vlog2.f32 %v214_v4  ;;  %v770_v9 = vmul.f32 -100.0, %v207_v5 }
  0x1a   : > { %569 = vlog2.f32 %v208_v6 }
  0x1b   : > { %571 = vlog2.f32 %v209_v7 }
  0x1f   : > { %v568_v10 = vpop.eup %567 }
  0x20   : > { %v570_v11 = vpop.eup %569  ;;  %v772_v12 = vmul.f32 0.6931472, %v568_v10 }
  0x21   : > { %v572_v13 = vpop.eup %571  ;;  %v774_v14 = vmul.f32 0.6931472, %v570_v11 }
  0x22   : > { %v776_v15 = vmul.f32 0.6931472, %v572_v13 }
  0x23 LB: >> { %v681_v18 = vmov 0   ;;  %vm240_vm0 = vcmask 261120   ;;  %v682_v22 = vmov 1.0   ;;  %vm256_vm1 = vcmask 130048   ;;  %s224_s11 = sadd.s32 1, %s679_s11   ;;  %s679_s11 = sphi %s784_s11, %s224_s11   ;;  %v675_v17 = vphi %v782_v17, %v858_v17   ;;  %v671_v16 = vphi %v780_v16, %v857_v16  }
  0x24   : >> { %573 = vset.pattern.permute.xlu0 %v681_v18  ;;  %495 = vmatpush.msra.mxu2 %v682_v22  ;;  %p221_p11 = scmp.ge.s32.totalorder %s224_s11, 100  }
  0x25   : >> { %230 = vperm.xlu0 %573, %v675_v17   ;;  %319 = vmatpush.msra.mxu1 %v682_v22  ;;  %v683_v3 = vmov (%p221_p11), 0   ;;  %s494_s17 = sshll.u32 (%p221_p11), %s727_s16, 4  ;;  %s375_s26 = sshll.u32 (%p221_p11), %s778_s10, 4  ;;  %s376_s26 = int_to_ptr.vmem [resolvable:$true] %s375_s26 }
  0x26   : >> { %496 = vmatpush.msra.mxu2 %v682_v22  ;;  %s374_s25 = scalar_lea.hbm (%p221_p11), %s854_s3, %s494_s17  ;;  %s363_s16 = scalar_lea.sflag (%p221_p11), [#allocation3], %s187_s24 }
  0x27   : >> { %320 = vmatpush.msra.mxu1 %v682_v22  ;;  %s377_s27 = sshll.u32 (%p221_p11), %s374_s25, 4  ;;  %s613_s5 = scalar_lea.hbm (%p221_p11), %s854_s3, 32  ;;  %s378_s27 = int_to_ptr.hbm [resolvable:$true] %s377_s27 }
  0x28   : >> { %497 = vmatpush.msra.mxu2 %v682_v22  ;;  %s607_s28 = sshra.s32 (%p221_p11), %s378_s27, 4  ;;  %s608_s28 = int_to_ptr.hbm [resolvable:$true] %s607_s28 }
  0x29   : >> { %321 = vmatpush.msra.mxu1 %v682_v22  ;;  %s609_s29 = scalar_lea.hbm (%p221_p11), %s608_s28, 16  ;;  %p614_p1 = scmp.lt.s32.totalorder (%p221_p11), %s608_s28, %s854_s3 }
  0x2a   : >> { %498 = vmatpush.msra.mxu2 %v682_v22  ;;  %p610_p12 = scmp.ne.s32.totalorder (%p221_p11), %s608_s28, %s609_s29  ;;  %p615_p2 = scmp.lt.s32.totalorder (%p221_p11), %s613_s5, %s609_s29 }
  0x2b   : >> { %322 = vmatpush.msra.mxu1 %v682_v22 }
  0x2c   : > { %p611_p13 = pnand (%p221_p11), %p610_p12, %p744_p5  ;;  %p616_p3 = por (%p221_p11), %p615_p2, %p614_p1 }
  0x2d   : >> { %235 = vperm.xlu0 %573, %v671_v16  }
  0x2e   : > { %p612_p0 = pneg (%p221_p11), %p611_p13 }
  0x30   : > { %p617_p4 = pnand (%p221_p11), %p616_p3, %p612_p0 }
  0x35   : > { %588 = vset.pattern.permute.xlu0 (%p221_p11), %v683_v3 }
  0x97   : >> { %v231_v19 = vpop.permute.xlu0 %230 }
  0x98   : >> { %v238_v20 = vadd.f32 %v231_v19, %v768_v8 }
  0x9a   : >> { %v241_v24 = vsel %vm240_vm0, %v238_v20, -inf }
  0x9f   : >> { %v236_v21 = vpop.permute.xlu0 %235 }
  0xa0   : >> { %v239_v23 = vadd.f32 %v236_v21, %v770_v9 }
  0xa2   : >> { %v242_v25 = vsel %vm240_vm0, %v239_v23, -inf }
  0xa3   : >> { %v243_v26 = vmax.f32 %v241_v24, %v242_v25 }
  0xa5   : >> { %v244_v27 = vrot.slane %v243_v26, 4 }
  0xa7   : >> { %v245_v28 = vmax.f32 %v243_v26, %v244_v27 }
  0xa9   : >> { %v246_v29 = vrot.slane %v245_v28, 2 }
  0xab   : >> { %v247_v30 = vmax.f32 %v245_v28, %v246_v29 }
  0xad   : >> { %v248_v31 = vrot.slane %v247_v30, 1 }
  0xaf   : >> { %v249_v32 = vmax.f32 %v247_v30, %v248_v31 }
  0xb1   : >> { %v251_v33 = vsub.f32 %v239_v23, %v249_v32  ;;  %v250_v34 = vsub.f32 %v238_v20, %v249_v32 }
  0xb3   : >> { %v254_v35 = vmul.f32 1.442695, %v251_v33  ;;  %v252_v36 = vmul.f32 1.442695, %v250_v34 }
  0xb5   : >> { %574 = vpow2.f32 %v254_v35 }
  0xb6   : >> { %576 = vpow2.f32 %v252_v36 }
  0xbb   : >> { %v575_v37 = vpop.eup %574 }
  0xbc   : >> { %274 = vmatpush.msra.mxu0 %v575_v37  ;;  %v577_v38 = vpop.eup %576 }
  0xbe   : >> { %275 = vmatpush.msra.mxu0 %v577_v38 }
  0xbf   : >> { %484 = vmatmul.msk.f32.vlgmr.msra.gmra.mxu0 %vm256_vm1, %v682_v22 }
 0x13c   : >> { %v277_v39 = vpop.f32.mrf.mxu0 }
 0x13d   : >> { %578 = vlog2.f32 %v277_v39 }
 0x143   : >> { %v579_v40 = vpop.eup %578 }
 0x144   : >> { %v281_v41 = vmul.f32 0.6931472, %v579_v40 }
 0x146   : >> { %v282_v42 = vadd.f32 %v281_v41, %v249_v32 }
 0x148   : >> { %v283_v43 = vsub.f32 %v772_v12, %v282_v42 }
 0x14a   : >> { %v285_v44 = vperm.slane %v283_v43, 0 }
 0x14c   : >> { %v288_v45 = vadd.f32 %v285_v44, %v770_v9  ;;  %v287_v47 = vadd.f32 %v285_v44, %v768_v8 }
 0x14e   : >> { %v292_v46 = vsel %vm240_vm0, %v288_v45, -inf  ;;  %v289_v48 = vsel %vm240_vm0, %v287_v47, -inf }
 0x14f   : >> { %293 = vmax.xlane.f32.xlu1 %v292_v46 }
 0x157   : >> { %290 = vmax.xlane.f32.xlu1 %v289_v48 }
 0x1c2   : >> { %v294_v49 = vpop.xlane.xlu1 %293 }
 0x1c3   : >> { %v296_v50 = vsub.f32 %v288_v45, %v294_v49 }
 0x1c5   : >> { %v299_v51 = vmul.f32 1.442695, %v296_v50 }
 0x1c7   : >> { %580 = vpow2.f32 %v299_v51 }
 0x1ca   : >> { %v291_v52 = vpop.xlane.xlu1 %290 }
 0x1cb   : >> { %v295_v53 = vsub.f32 %v287_v47, %v291_v52 }
 0x1cd   : >> { %v581_v54 = vpop.eup %580  ;;  %v297_v55 = vmul.f32 1.442695, %v295_v53 }
 0x1ce   : >> { %486 = vmatmul.msk.f32.vlgmr.msra.gmra.mxu2 %vm240_vm0, %v581_v54 }
 0x1cf   : >> { %582 = vpow2.f32 %v297_v55 }
 0x1d5   : >> { %v583_v56 = vpop.eup %582 }
 0x1d6   : >> { %485 = vmatmul.msk.f32.vlgmr.msra.gmra.mxu1 %vm240_vm0, %v583_v56 }
 0x251   : >> { %v327_v57 = vpop.f32.mrf.mxu2 }
 0x252   : >> { %584 = vlog2.f32 %v327_v57 }
 0x253   : >> { %v324_v58 = vpop.f32.mrf.mxu1 }
 0x254   : >> { %586 = vlog2.f32 %v324_v58 }
 0x258   : >> { %v585_v59 = vpop.eup %584 }
 0x259   : >> { %v333_v60 = vmul.f32 0.6931472, %v585_v59 }
 0x25a   : >> { %v587_v61 = vpop.eup %586 }
 0x25b   : >> { %v335_v62 = vadd.f32 %v333_v60, %v294_v49  ;;  %v331_v63 = vmul.f32 0.6931472, %v587_v61 }
 0x25d   : >> { %v337_v0 = vsub.f32 %v776_v15, %v335_v62   ;;  %v334_v1 = vadd.f32 %v331_v63, %v291_v52  ;;  %223 = sbr.rel (!%p221_p11) target bundleno = 35 (0x23), region = 80 }
 0x25f   : >> { %v336_v2 = vsub.f32 %v774_v14, %v334_v1   ;;  %v857_v16 = vmov %v337_v0 }
 0x261   : >> { %v858_v17 = vmov %v336_v2  ;;  %340 = vperm.xlu0 (%p221_p11), %588, %v336_v2  }
 0x269   : > { %345 = vperm.xlu0 %588, %v337_v0  }
 0x2d3   : > { %v341_v4 = vpop.permute.xlu0 %340 }
 0x2d4   : > { %v348_v5 = vadd.f32 %v341_v4, %v768_v8 }
 0x2d6   : > { %v353_v6 = vadd.f32 %v348_v5, %v285_v44 }
 0x2d8   : > { %v355_v7 = vmul.f32 1.442695, %v353_v6 }
 0x2da   : > { %589 = vpow2.f32 %v355_v7 }
 0x2db   : > { %v346_v10 = vpop.permute.xlu0 %345 }
 0x2dc   : > { %v349_v11 = vadd.f32 %v346_v10, %v770_v9 }
 0x2de   : > { %v354_v13 = vadd.f32 %v349_v11, %v285_v44 }
 0x2e0   : > { %v590_v12 = vpop.eup %589  ;;  %v357_v14 = vmul.f32 1.442695, %v354_v13 }
 0x2e1   : > { %360 = vst.msk [vmem:[%s778_s10] sm:$0xff] %vm240_vm0, %v590_v12 }
 0x2e2   : > { %591 = vpow2.f32 %v357_v14 }
 0x2e8   : > { %v592_v8 = vpop.eup %591 }
 0x2e9   : > { %361 = vst.msk [vmem:[%s778_s10 + $0x8] sm:$0xff] %vm240_vm0, %v592_v8 }
 0x2ea   : > { %620 = shalt.err (!%p617_p4)
}
 0x2eb   : > { %s684_s24 = smov 128   ;;  %s685_s8 = smov 8  }
 0x2ec   : > { %499 = dma.vmem_to_hbm [thread:$0]  (%p744_p5), %s376_s26, 256, %s378_s27, %s363_s16, %s684_s24, %s684_s24, %s685_s8  }
 0x2ed PF: > { %p505_p7 = scmp.ge.s32.totalorder %s667_s15, 2  ;;  %s392_s9 = sand.u32 1, %s655_s12  }
 0x2ee   : > { %s393_s10 = scalar_lea.sflag [#allocation3], %s392_s9 }
 0x2ef   : > { %p502_p8 = pnand %p505_p7, %p748_p6 }
 0x2f1   : > { %p503_p9 = pneg %p502_p8 }
 0x2f3   : > { %650 = dma.done.wait (%p503_p9), %s393_s10, 256  }
 0x2f4   : > { %652 = vsyncadd (%p503_p9), %s393_s10, 4294967040  ;;  %p13_p10 = scmp.ge.s32.totalorder %s731_s18, 4   ;;  %s859_s12 = smov %s659_s13 }
 0x2f5   : > { %s860_s13 = smov %s663_s14  ;;  %s861_s14 = smov %s742_s21 }
 0x2f6   : > { %s862_s15 = smov %s731_s18  ;;  %15 = sbr.rel (!%p13_p10) target bundleno = 3 (0x3), region = 91 }
 0x2fb   :  { %399 = vsyncpa [#allocation3], 1 }
 0x2fc   :  { %401 = vsyncpa [#allocation3 + $0x1], 1 }

</bundles_post_ra>
